<compile_context>
chip_gen: v7x
topology: tpu7x:2x2x1
jax: 0.10.0
libtpu: 0.0.40
codegen_flags: <defaults>
</compile_context>

<pallas_src>
import jax
import jax.numpy as jnp
from jax.experimental import pallas as pl
from jax.experimental.pallas import tpu as pltpu


def policy_net_kernel(x_ref, w1t_ref, ln_ref, w2t_ref, b2_ref, out_ref):
    # x arrives in natural (batch_tile, state) layout; transpose in-kernel so
    # all subsequent compute is lane-dense along the batch axis.
    xt = x_ref[...].astype(jnp.float32).T                      # (state, bt)

    # ---- Linear(state -> hidden), transposed: (hidden, bt) ----
    h = jnp.dot(w1t_ref[...], xt, preferred_element_type=jnp.float32)

    lnp = ln_ref[...]                                          # (hidden, 3) = [b1 | gamma | beta]
    h = h + lnp[:, 0:1]

    # ---- LayerNorm over hidden (axis 0), eps = 1e-5 (PyTorch default) ----
    mean = jnp.mean(h, axis=0, keepdims=True)
    c = h - mean
    var = jnp.mean(c * c, axis=0, keepdims=True)
    h = c * jax.lax.rsqrt(var + 1e-5)
    h = h * lnp[:, 1:2] + lnp[:, 2:3]

    # ---- ReLU ----
    h = jnp.maximum(h, 0.0)

    # ---- Linear(hidden -> action), transposed; +1e-5 folded into b2 ----
    z = jnp.dot(w2t_ref[...], h, preferred_element_type=jnp.float32) + b2_ref[...]

    # ---- probs = normalize(exp(z - max(z)) + 1e-5)  (simplified tail) ----
    zmax = jnp.max(z, axis=0, keepdims=True)
    sm = jnp.exp(z - zmax) + 1e-5
    # Exact reciprocal: approx=True perturbs probs by ~1e-4 (fails 1e-5 tol).
    probs = sm * pl.reciprocal(jnp.sum(sm, axis=0, keepdims=True), approx=False)

    out_ref[...] = probs.astype(out_ref.dtype)


def policy_net_forward(x, w1, b1, gamma, beta, w2, b2, *, batch_tile=None):
    """x: (B, state_dim); w1: (state, hidden); w2: (hidden, action);
    b1/gamma/beta: (1, hidden); b2: (1, action).  Returns (B, action)."""
    B, state_dim = x.shape
    hidden_dim = w1.shape[1]
    action_dim = w2.shape[1]

    if batch_tile is None:
        if B <= 128:
            batch_tile = B                      # single full block (always legal)
        else:
            # Target ~2 lane-aligned tiles (keeps both v7x TensorCores busy via
            # the "parallel" axis) and amortizes the ~0.35us per-grid-step
            # overhead; cap at 8192 lanes so double-buffered x/out blocks plus
            # Mosaic temporaries stay ~20 MiB of VMEM (fits every generation
            # with the explicit 40 MiB limit below).  Sweepable via batch_tile.
            batch_tile = max(128, min(8192, 128 * pl.cdiv(pl.cdiv(B, 2), 128)))
    assert batch_tile == B or batch_tile % 128 == 0

    n_tiles = pl.cdiv(B, batch_tile)

    # Tiny, fully-resident operands (pure plumbing on ~KB-sized arrays).
    w1t = w1.T                                                  # (hidden, state)
    w2t = w2.T                                                  # (action, hidden)
    ln = jnp.concatenate(
        [jnp.reshape(b1, (hidden_dim, 1)),
         jnp.reshape(gamma, (hidden_dim, 1)),
         jnp.reshape(beta, (hidden_dim, 1))], axis=1)           # (hidden, 3)
    b2c = jnp.reshape(b2, (action_dim, 1)) + 1e-5               # fold softmax's +1e-5

    resident = lambda shape: pl.BlockSpec(shape, lambda i: (0, 0))

    out_t = pl.pallas_call(
        policy_net_kernel,
        out_shape=jax.ShapeDtypeStruct((action_dim, B), x.dtype),
        grid_spec=pltpu.PrefetchScalarGridSpec(
            num_scalar_prefetch=0,
            grid=(n_tiles,),
            in_specs=[
                pl.BlockSpec((batch_tile, state_dim), lambda i: (i, 0)),  # x (natural layout)
                resident((hidden_dim, state_dim)),                        # w1^T
                resident((hidden_dim, 3)),                                # [b1 | gamma | beta]
                resident((action_dim, hidden_dim)),                       # w2^T
                resident((action_dim, 1)),                                # b2 + 1e-5
            ],
            out_specs=pl.BlockSpec((action_dim, batch_tile), lambda i: (0, i)),
        ),
        compiler_params=pltpu.CompilerParams(
            dimension_semantics=("parallel",),
            # Above v5e's 16 MiB default scoped limit, under v7x's 64 MiB
            # physical; ~2x headroom over worst-case usage at batch_tile=8192.
            vmem_limit_bytes=40 * 1024 * 1024,
        ),
    )(x, w1t, ln, w2t, b2c)

    return out_t.T                                              # (B, action)


if __name__ == "__main__":
    state_dim, hidden_dim, action_dim = 16, 32, 8

    key = jax.random.PRNGKey(0)
    kx, kw1, kb1, kw2, kb2, kx2, kx3 = jax.random.split(key, 7)

    # Deterministic synthetic parameters (Linear weights stored as (in, out)).
    w1 = jax.random.normal(kw1, (state_dim, hidden_dim), jnp.float32) * 0.1
    b1 = jax.random.normal(kb1, (1, hidden_dim), jnp.float32) * 0.1
    gamma = jnp.ones((1, hidden_dim), jnp.float32)   # LayerNorm weight init
    beta = jnp.zeros((1, hidden_dim), jnp.float32)   # LayerNorm bias init
    w2 = jax.random.normal(kw2, (hidden_dim, action_dim), jnp.float32) * 0.1
    b2 = jax.random.normal(kb2, (1, action_dim), jnp.float32) * 0.1

    def reference(x):
        # Pure-JAX reference of the ORIGINAL (unsimplified) module math.
        h = x @ w1 + b1
        mu = h.mean(-1, keepdims=True)
        var = ((h - mu) ** 2).mean(-1, keepdims=True)
        h = (h - mu) / jnp.sqrt(var + 1e-5) * gamma + beta
        h = jnp.maximum(h, 0.0)
        z = h @ w2 + b2
        ls = jax.nn.log_softmax(z + 1e-5, axis=-1)
        ls = jnp.clip(ls - ls.max(-1, keepdims=True), -1e10, 1.0)
        sm = jnp.exp(ls) + 1e-5
        return sm / sm.sum(-1, keepdims=True)

    # Small batch (single sub-128-lane tile, block == full array).
    x_small = jax.random.normal(kx, (8, state_dim), dtype=jnp.float32)
    p_small = policy_net_forward(x_small, w1, b1, gamma, beta, w2, b2)
    jax.block_until_ready(p_small)
    assert p_small.shape == (8, action_dim)
    assert jnp.allclose(p_small, reference(x_small), atol=1e-5, rtol=1e-5)
    assert jnp.allclose(p_small.sum(-1), 1.0, atol=1e-5)

    # Exactly-divisible multi-tile batch (2 x 128 lanes).
    x_mid = jax.random.normal(kx3, (256, state_dim), dtype=jnp.float32)
    p_mid = policy_net_forward(x_mid, w1, b1, gamma, beta, w2, b2)
    jax.block_until_ready(p_mid)
    assert p_mid.shape == (256, action_dim)
    assert jnp.allclose(p_mid, reference(x_mid), atol=1e-5, rtol=1e-5)

    # Larger, non-multiple-of-tile batch (multi-step grid + ragged last block).
    x_big = jax.random.normal(kx2, (1000, state_dim), dtype=jnp.float32)
    p_big = policy_net_forward(x_big, w1, b1, gamma, beta, w2, b2)
    jax.block_until_ready(p_big)
    assert p_big.shape == (1000, action_dim)
    assert jnp.allclose(p_big, reference(x_big), atol=1e-5, rtol=1e-5)
    assert jnp.allclose(p_big.sum(-1), 1.0, atol=1e-5)

    print("KERNEL_OK")
</pallas_src>

<mosaic_0001>
module attributes {stable_mosaic.version = 11 : i64} {
  func.func @policy_net_kernel(%arg0: i32, %arg1: memref<8x16xf32, #tpu.memory_space<vmem>>, %arg2: memref<32x16xf32, #tpu.memory_space<vmem>>, %arg3: memref<32x3xf32, #tpu.memory_space<vmem>>, %arg4: memref<8x32xf32, #tpu.memory_space<vmem>>, %arg5: memref<8x1xf32, #tpu.memory_space<vmem>>, %arg6: memref<8x8xf32, #tpu.memory_space<vmem>>) attributes {dimension_semantics = [#tpu.dimension_semantics<parallel>], iteration_bounds = array<i64: 1>, scalar_prefetch = 0 : i64, scratch_operands = 0 : i64, tpu.core_type = #tpu.core_type<tc>, window_params = [{transform_indices = @transform_0, window_bounds = array<i64: 8, 16>}, {pipeline_mode = #tpu.pipeline_mode<synchronous>, transform_indices = @transform_1, window_bounds = array<i64: 32, 16>}, {pipeline_mode = #tpu.pipeline_mode<synchronous>, transform_indices = @transform_2, window_bounds = array<i64: 32, 3>}, {pipeline_mode = #tpu.pipeline_mode<synchronous>, transform_indices = @transform_3, window_bounds = array<i64: 8, 32>}, {pipeline_mode = #tpu.pipeline_mode<synchronous>, transform_indices = @transform_4, window_bounds = array<i64: 8, 1>}, {transform_indices = @transform_5, window_bounds = array<i64: 8, 8>}]} {
    %c0 = arith.constant 0 : index
    %c0_0 = arith.constant 0 : index
    %0 = vector.load %arg1[%c0, %c0_0] : memref<8x16xf32, #tpu.memory_space<vmem>>, vector<8x16xf32>
    %1 = tpu.transpose %0, [1, 0] : vector<8x16xf32> -> vector<16x8xf32>
    %c0_1 = arith.constant 0 : index
    %c0_2 = arith.constant 0 : index
    %2 = vector.load %arg2[%c0_1, %c0_2] : memref<32x16xf32, #tpu.memory_space<vmem>>, vector<32x16xf32>
    %cst = arith.constant dense<0.000000e+00> : vector<32x8xf32>
    %3 = tpu.matmul %2, %1, %cst {dimension_numbers = #tpu.dot_dimension_numbers<[1], [0], [0], [1], [0, 0, 1, 1], [], []>} : vector<32x16xf32>, vector<16x8xf32>, vector<32x8xf32> -> vector<32x8xf32>
    %c0_3 = arith.constant 0 : index
    %c0_4 = arith.constant 0 : index
    %4 = vector.load %arg3[%c0_3, %c0_4] : memref<32x3xf32, #tpu.memory_space<vmem>>, vector<32x3xf32>
    %5 = vector.extract_strided_slice %4 {offsets = [0, 0], sizes = [32, 1], strides = [1, 1]} : vector<32x3xf32> to vector<32x1xf32>
    %6 = vector.broadcast %5 : vector<32x1xf32> to vector<32x8xf32>
    %7 = arith.addf %3, %6 : vector<32x8xf32>
    %cst_5 = arith.constant dense<0.000000e+00> : vector<8xf32>
    %8 = vector.multi_reduction <add>, %7, %cst_5 [0] : vector<32x8xf32> to vector<8xf32>
    %9 = vector.shape_cast %8 : vector<8xf32> to vector<1x8xf32>
    %cst_6 = arith.constant 3.200000e+01 : f32
    %10 = vector.broadcast %cst_6 : f32 to vector<1x8xf32>
    %11 = arith.divf %9, %10 : vector<1x8xf32>
    %12 = vector.broadcast %11 : vector<1x8xf32> to vector<32x8xf32>
    %13 = arith.subf %7, %12 : vector<32x8xf32>
    %14 = arith.mulf %13, %13 : vector<32x8xf32>
    %cst_7 = arith.constant dense<0.000000e+00> : vector<8xf32>
    %15 = vector.multi_reduction <add>, %14, %cst_7 [0] : vector<32x8xf32> to vector<8xf32>
    %16 = vector.shape_cast %15 : vector<8xf32> to vector<1x8xf32>
    %cst_8 = arith.constant 3.200000e+01 : f32
    %17 = vector.broadcast %cst_8 : f32 to vector<1x8xf32>
    %18 = arith.divf %16, %17 : vector<1x8xf32>
    %cst_9 = arith.constant 9.99999974E-6 : f32
    %19 = vector.broadcast %cst_9 : f32 to vector<1x8xf32>
    %20 = arith.addf %18, %19 : vector<1x8xf32>
    %21 = math.rsqrt %20 : vector<1x8xf32>
    %22 = vector.broadcast %21 : vector<1x8xf32> to vector<32x8xf32>
    %23 = arith.mulf %13, %22 : vector<32x8xf32>
    %24 = vector.extract_strided_slice %4 {offsets = [0, 1], sizes = [32, 1], strides = [1, 1]} : vector<32x3xf32> to vector<32x1xf32>
    %25 = vector.broadcast %24 : vector<32x1xf32> to vector<32x8xf32>
    %26 = arith.mulf %23, %25 : vector<32x8xf32>
    %27 = vector.extract_strided_slice %4 {offsets = [0, 2], sizes = [32, 1], strides = [1, 1]} : vector<32x3xf32> to vector<32x1xf32>
    %28 = vector.broadcast %27 : vector<32x1xf32> to vector<32x8xf32>
    %29 = arith.addf %26, %28 : vector<32x8xf32>
    %cst_10 = arith.constant 0.000000e+00 : f32
    %30 = vector.broadcast %cst_10 : f32 to vector<32x8xf32>
    %31 = arith.maximumf %29, %30 : vector<32x8xf32>
    %c0_11 = arith.constant 0 : index
    %c0_12 = arith.constant 0 : index
    %32 = vector.load %arg4[%c0_11, %c0_12] : memref<8x32xf32, #tpu.memory_space<vmem>>, vector<8x32xf32>
    %cst_13 = arith.constant dense<0.000000e+00> : vector<8x8xf32>
    %33 = tpu.matmul %32, %31, %cst_13 {dimension_numbers = #tpu.dot_dimension_numbers<[1], [0], [0], [1], [0, 0, 1, 1], [], []>} : vector<8x32xf32>, vector<32x8xf32>, vector<8x8xf32> -> vector<8x8xf32>
    %c0_14 = arith.constant 0 : index
    %c0_15 = arith.constant 0 : index
    %34 = vector.load %arg5[%c0_14, %c0_15] : memref<8x1xf32, #tpu.memory_space<vmem>>, vector<8x1xf32>
    %35 = vector.broadcast %34 : vector<8x1xf32> to vector<8x8xf32>
    %36 = arith.addf %33, %35 : vector<8x8xf32>
    %cst_16 = arith.constant dense<0xFF800000> : vector<8xf32>
    %37 = vector.multi_reduction <maximumf>, %36, %cst_16 [0] : vector<8x8xf32> to vector<8xf32>
    %38 = vector.shape_cast %37 : vector<8xf32> to vector<1x8xf32>
    %39 = vector.broadcast %38 : vector<1x8xf32> to vector<8x8xf32>
    %40 = arith.subf %36, %39 : vector<8x8xf32>
    %41 = math.exp %40 : vector<8x8xf32>
    %cst_17 = arith.constant 9.99999974E-6 : f32
    %42 = vector.broadcast %cst_17 : f32 to vector<8x8xf32>
    %43 = arith.addf %41, %42 : vector<8x8xf32>
    %cst_18 = arith.constant dense<0.000000e+00> : vector<8xf32>
    %44 = vector.multi_reduction <add>, %43, %cst_18 [0] : vector<8x8xf32> to vector<8xf32>
    %45 = vector.shape_cast %44 : vector<8xf32> to vector<1x8xf32>
    %46 = tpu.reciprocal %45 : vector<1x8xf32> -> vector<1x8xf32>
    %47 = vector.broadcast %46 : vector<1x8xf32> to vector<8x8xf32>
    %48 = arith.mulf %43, %47 : vector<8x8xf32>
    %c0_19 = arith.constant 0 : index
    %c0_20 = arith.constant 0 : index
    %49 = vector.load %arg6[%c0_19, %c0_20] : memref<8x8xf32, #tpu.memory_space<vmem>>, vector<8x8xf32>
    tpu.vector_store %arg6[%c0_19, %c0_20], %48 {strides = array<i32>} : memref<8x8xf32, #tpu.memory_space<vmem>>, vector<8x8xf32>,
    return
  }
  func.func @transform_0(%arg0: i32) -> (i32, i32) {
    %c0_i32 = arith.constant 0 : i32
    %c0_i32_0 = arith.constant 0 : i32
    return %arg0, %c0_i32 : i32, i32
  }
  func.func @transform_1(%arg0: i32) -> (i32, i32) {
    %c0_i32 = arith.constant 0 : i32
    %c0_i32_0 = arith.constant 0 : i32
    %c0_i32_1 = arith.constant 0 : i32
    return %c0_i32, %c0_i32_0 : i32, i32
  }
  func.func @transform_2(%arg0: i32) -> (i32, i32) {
    %c0_i32 = arith.constant 0 : i32
    %c0_i32_0 = arith.constant 0 : i32
    %c0_i32_1 = arith.constant 0 : i32
    return %c0_i32, %c0_i32_0 : i32, i32
  }
  func.func @transform_3(%arg0: i32) -> (i32, i32) {
    %c0_i32 = arith.constant 0 : i32
    %c0_i32_0 = arith.constant 0 : i32
    %c0_i32_1 = arith.constant 0 : i32
    return %c0_i32, %c0_i32_0 : i32, i32
  }
  func.func @transform_4(%arg0: i32) -> (i32, i32) {
    %c0_i32 = arith.constant 0 : i32
    %c0_i32_0 = arith.constant 0 : i32
    %c0_i32_1 = arith.constant 0 : i32
    return %c0_i32, %c0_i32_0 : i32, i32
  }
  func.func @transform_5(%arg0: i32) -> (i32, i32) {
    %c0_i32 = arith.constant 0 : i32
    %c0_i32_0 = arith.constant 0 : i32
    return %c0_i32, %arg0 : i32, i32
  }
}

</mosaic_0001>

<bundles_post_ra>
// kernel: tpu_custom_call.1
= control target key start
LH: loop header
LB: loop body
LE: loop exit
PB: predicated region body
PF: predicated region fallthrough
CT: control target
= control target key end

     0   :  { %vm50_vm0 = vcmask 130048   ;;  %v442_v4 = vmov 0   ;;  %s543_s0 = inlined_call_operand.vmem [shape: f32[8,16], index: 0, kind: input, shape index: {}]   ;;  %s544_s1 = inlined_call_operand.vmem [shape: f32[32,16], index: 1, kind: input, shape index: {}]   ;;  %s545_s2 = inlined_call_operand.vmem [shape: f32[32,3], index: 2, kind: input, shape index: {}]   ;;  %s546_s3 = inlined_call_operand.vmem [shape: f32[8,32], index: 3, kind: input, shape index: {}]   ;;  %s547_s4 = inlined_call_operand.vmem [shape: f32[8,1], index: 4, kind: input, shape index: {}]   ;;  %s548_s5 = inlined_call_operand.hbm [shape: f32[8,8], index: 5, kind: output, shape index: {}]  }
   0x1   :  { %v21_v0 = vld [vmem:[%s543_s0] sm:$0xff]  ;;  %v23_v3 = vld [vmem:[%s544_s1 + $0x8] sm:$0xff]  ;;  %403 = vset.pattern.permute.xlu0 %v442_v4  ;;  %v28_v5 = vld [vmem:[%s545_s2 + $0x10] sm:$0xff]  ;;  %404 = vset.pattern.permute.xlu1 %v442_v4 }
   0x2   :  { %v22_v1 = vld [vmem:[%s544_s1] sm:$0xff]  ;;  %371 = vmatprep.subr.msk.mxu0 %vm50_vm0, %v21_v0  ;;  %v24_v6 = vld [vmem:[%s544_s1 + $0x10] sm:$0xff] }
   0x3   :  { %373 = vmatprep.mubr.msk.f32.mxu0 %vm50_vm0, %v22_v1  ;;  %v26_v2 = vld [vmem:[%s545_s2] sm:$0xff]  ;;  %372 = vmatpush3.xpose.msk.msra.mxu0 %vm50_vm0, %v21_v0 }
   0x4   :  { %32 = vperm.xlu0 %403, %v26_v2  }
   0x5   :  { %10 = vsyncpa [#allocation3], 0  ;;  %42 = vperm.xlu1 %404, %v28_v5   ;;  %v27_v7 = vld [vmem:[%s545_s2 + $0x8] sm:$0xff]  ;;  %v29_v8 = vld [vmem:[%s545_s2 + $0x18] sm:$0xff]  ;;  %v443_v10 = vmov 1   ;;  %v444_v11 = vmov 2  }
   0x6   :  { %374 = vmatmul.mubr.msk.f32.vlgmr.msra.gmra.mrb[0].mxu0 %vm50_vm0, %v23_v3  ;;  %v25_v9 = vld [vmem:[%s544_s1 + $0x18] sm:$0xff]  ;;  %v445_v12 = vmov 0.0|0.0   ;;  %vm446_vm1 = vmmov 0   ;;  %v447_v13 = vmov 0.0   ;;  %v240_v14 = vld [vmem:[%s547_s4] sm:$0xff]  ;;  %vm151_vm2 = vcmask 64512  }
   0x7   :  { %376 = vmatprep.mubr.msk.f32.mxu0 %vm50_vm0, %v24_v6  ;;  %390 = vmatprep.subr.bf16.mxu1 %v445_v12  ;;  %vm246_vm3 = vcmask 261120  }
   0x8   :  { %37 = vperm.xlu0 %403, %v27_v7   ;;  %387 = vmatprep.mubr.msk.f32.mxu1 %vm446_vm1, %v447_v13 }
   0x9   :  { %47 = vperm.xlu1 %404, %v29_v8  }
   0xa   :  { %377 = vmatmul.mubr.msk.f32.gmra.mrb[2].mxu0 %vm50_vm0, %v25_v9 }
   0xc   :  { %405 = vset.pattern.permute.xlu0 %v443_v10 }
   0xd   :  { %406 = vset.pattern.permute.xlu1 %v443_v10  ;;  %196 = vperm.xlu0 %405, %v26_v2  }
   0xe   :  { %200 = vperm.xlu1 %406, %v27_v7  }
  0x11   :  { %408 = vset.pattern.permute.xlu0 %v444_v11 }
  0x12   :  { %407 = vset.pattern.permute.xlu1 %v444_v11  ;;  %220 = vperm.xlu0 %408, %v27_v7  }
  0x13   :  { %216 = vperm.xlu1 %407, %v26_v2  }
  0x16   :  { %224 = vperm.xlu0 %408, %v28_v5  }
  0x17   :  { %409 = vset.pattern.permute.xlu1 %v443_v10 }
  0x18   :  { %204 = vperm.xlu1 %409, %v28_v5  }
  0x1a   :  { %411 = vset.pattern.permute.xlu0 %v442_v4 }
  0x1b   :  { %243 = vperm.xlu0 %411, %v240_v14  }
  0x1c   :  { %208 = vperm.xlu1 %409, %v29_v8  }
  0x20   :  { %410 = vset.pattern.permute.xlu1 %v444_v11 }
  0x21   :  { %228 = vperm.xlu1 %410, %v29_v8  }
  0x83   :  { %v33_v15 = vpop.permute.xlu0 %32 }
  0x84   :  { %v43_v16 = vpop.permute.xlu1 %42 }
  0x87   :  { %v38_v17 = vpop.permute.xlu0 %37 }
  0x88   :  { %v48_v23 = vpop.permute.xlu1 %47 }
  0x8c   :  { %v197_v3 = vpop.permute.xlu0 %196 }
  0x8d   :  { %v201_v58 = vpop.permute.xlu1 %200 }
  0x91   :  { %v221_v5 = vpop.permute.xlu0 %220 }
  0x92   :  { %v217_v63 = vpop.permute.xlu1 %216 }
  0x95   :  { %v225_v13 = vpop.permute.xlu0 %224 }
  0x97   :  { %v205_v2 = vpop.permute.xlu1 %204 }
  0x9b   :  { %v209_v4 = vpop.permute.xlu1 %208 }
  0xa0   :  { %v229_v11 = vpop.permute.xlu1 %228 }
  0xd9   :  { %v375_v18 = vpop.f32.mrb[0].mxu0 }
  0xda   :  { %v138_v19 = vadd.f32 %v375_v18, %v38_v17  ;;  %v132_v20 = vpop.f32.mrb[1].mxu0 }
  0xdb   :  { %v133_v21 = vadd.f32 %v132_v20, %v33_v15 }
  0xdc   :  { %v153_v22 = vsel %vm151_vm2, %v138_v19, 0.0 }
  0xdd   :  { %v152_v24 = vsel %vm151_vm2, %v133_v21, 0.0  ;;  %v378_v25 = vpop.f32.mrb[2].mxu0 }
  0xde   :  { %v154_v26 = vadd.f32 %v153_v22, %v152_v24  ;;  %v142_v27 = vpop.f32.mrb[3].mxu0  ;;  %v148_v28 = vadd.f32 %v378_v25, %v48_v23 }
  0xdf   :  { %v143_v29 = vadd.f32 %v142_v27, %v43_v16 }
  0xe0   :  { %v157_v32 = vsel %vm151_vm2, %v148_v28, 0.0 }
  0xe1   :  { %v155_v30 = vsel %vm151_vm2, %v143_v29, 0.0 }
  0xe2   :  { %v156_v31 = vadd.f32 %v155_v30, %v154_v26 }
  0xe4   :  { %v158_v33 = vadd.f32 %v157_v32, %v156_v31 }
  0xe6   :  { %v159_v34 = vrot.slane %v158_v33, 4 }
  0xe8   :  { %v160_v35 = vadd.f32 %v159_v34, %v158_v33 }
  0xea   :  { %v161_v36 = vrot.slane %v160_v35, 2 }
  0xec   :  { %v162_v37 = vadd.f32 %v161_v36, %v160_v35 }
  0xee   :  { %v163_v38 = vrot.slane %v162_v37, 1 }
  0xf0   :  { %v164_v39 = vadd.f32 %v163_v38, %v162_v37 }
  0xf2   :  { %v166_v40 = vmul.f32 0.03125, %v164_v39 }
  0xf4   :  { %v169_v41 = vsub.f32 %v143_v29, %v166_v40  ;;  %v170_v42 = vsub.f32 %v148_v28, %v166_v40  ;;  %v167_v43 = vsub.f32 %v133_v21, %v166_v40  ;;  %v168_v44 = vsub.f32 %v138_v19, %v166_v40  ;;  %v239_v28 = vld [vmem:[%s546_s3] sm:$0xff]  ;;  %v244_v29 = vpop.permute.xlu0 %243  ;;  %s448_s3 = smov [#allocation2]  }
  0xf5   :  { %s347_s11 = sshll.u32 %s448_s3, 4  ;;  %s348_s11 = int_to_ptr.vmem [resolvable:$true] %s347_s11 }
  0xf6   :  { %v173_v45 = vmul.f32 %v169_v41, %v169_v41  ;;  %v171_v46 = vmul.f32 %v167_v43, %v167_v43  ;;  %v172_v47 = vmul.f32 %v168_v44, %v168_v44  ;;  %v174_v48 = vmul.f32 %v170_v42, %v170_v42  ;;  %s418_s12 = scalar_lea.vmem %s348_s11, 128  ;;  %p423_p1 = scmp.lt.s32.totalorder %s348_s11, %s348_s11 }
  0xf7   :  { %p419_p0 = scmp.ne.s32.totalorder %s348_s11, %s418_s12  ;;  %p424_p2 = scmp.lt.s32.totalorder %s418_s12, %s418_s12 }
  0xf8   :  { %v175_v49 = vsel %vm151_vm2, %v171_v46, 0.0  ;;  %v176_v50 = vsel %vm151_vm2, %v172_v47, 0.0  ;;  %v178_v52 = vsel %vm151_vm2, %v173_v45, 0.0  ;;  %v180_v54 = vsel %vm151_vm2, %v174_v48, 0.0 }
  0xf9   :  { %v177_v51 = vadd.f32 %v176_v50, %v175_v49  ;;  %p425_p3 = por %p424_p2, %p423_p1 }
  0xfb   :  { %v179_v53 = vadd.f32 %v178_v52, %v177_v51  ;;  %p426_p4 = pnand %p425_p3, %p419_p0 }
  0xfd   :  { %v181_v55 = vadd.f32 %v180_v54, %v179_v53 }
  0xff   :  { %v182_v56 = vrot.slane %v181_v55, 4 }
 0x101   :  { %v183_v57 = vadd.f32 %v182_v56, %v181_v55 }
 0x103   :  { %v184_v59 = vrot.slane %v183_v57, 2 }
 0x105   :  { %v185_v60 = vadd.f32 %v184_v59, %v183_v57 }
 0x107   :  { %v186_v61 = vrot.slane %v185_v60, 1 }
 0x109   :  { %v187_v62 = vadd.f32 %v186_v61, %v185_v60 }
 0x10b   :  { %v188_v0 = vmul.f32 0.03125, %v187_v62 }
 0x10d   :  { %v189_v1 = vadd.f32 1e-05, %v188_v0 }
 0x10f   :  { %412 = vrsqrt.f32 %v189_v1 }
 0x119   :  { %v413_v6 = vpop.eup %412 }
 0x11a   :  { %v192_v7 = vmul.f32 %v413_v6, %v168_v44  ;;  %v193_v8 = vmul.f32 %v413_v6, %v169_v41  ;;  %v191_v9 = vmul.f32 %v413_v6, %v167_v43  ;;  %v194_v10 = vmul.f32 %v413_v6, %v170_v42 }
 0x11c   :  { %v212_v14 = vmul.f32 %v201_v58, %v192_v7  ;;  %v213_v15 = vmul.f32 %v205_v2, %v193_v8  ;;  %v211_v16 = vmul.f32 %v197_v3, %v191_v9  ;;  %v214_v17 = vmul.f32 %v209_v4, %v194_v10 }
 0x11e   :  { %v231_v18 = vadd.f32 %v217_v63, %v211_v16  ;;  %v232_v19 = vadd.f32 %v221_v5, %v212_v14  ;;  %v234_v20 = vadd.f32 %v229_v11, %v214_v17  ;;  %v233_v21 = vadd.f32 %v225_v13, %v213_v15 }
 0x120   :  { %v235_v22 = vmax.f32 %v231_v18, 0.0  ;;  %v236_v23 = vmax.f32 %v232_v19, 0.0  ;;  %v238_v24 = vmax.f32 %v234_v20, 0.0  ;;  %v237_v25 = vmax.f32 %v233_v21, 0.0 }
 0x122   :  { %v394_v26 = vpack.c.bf16 %v238_v24, %v237_v25  ;;  %v391_v27 = vpack.c.bf16 %v236_v23, %v235_v22 }
 0x124   :  { %392 = vmatpush3.bf16.msra.mxu1 %v391_v27 }
 0x125   :  { %393 = vmatprep.subr.bf16.mxu1 %v445_v12 }
 0x128   :  { %395 = vmatpush3.bf16.msra.mxu1 %v394_v26 }
 0x12b   :  { %388 = vmatmul.mubr.msk.f32.vlgmr.msra.gmra.mrb[0].mxu1 %vm246_vm3, %v239_v28 }
 0x1fe   :  { %v316_v30 = vpop.f32.mrb[0].mxu1 }
 0x1ff   :  { %v317_v31 = vadd.f32 %v316_v30, %v244_v29  ;;  %v389_v32 = vpop.f32.mrb[1].mxu1 }
 0x201   :  { %v320_v33 = vsel %vm151_vm2, %v317_v31, -inf }
 0x202   :  { %v321_v34 = vrot.slane %v320_v33, 4 }
 0x204   :  { %v322_v35 = vmax.f32 %v320_v33, %v321_v34 }
 0x206   :  { %v323_v36 = vrot.slane %v322_v35, 2 }
 0x208   :  { %v324_v37 = vmax.f32 %v322_v35, %v323_v36 }
 0x20a   :  { %v325_v38 = vrot.slane %v324_v37, 1 }
 0x20c   :  { %v326_v39 = vmax.f32 %v324_v37, %v325_v38 }
 0x20e   :  { %v327_v12 = vsub.f32 %v317_v31, %v326_v39 }
 0x210   :  { %v328_v40 = vmul.f32 1.442695, %v327_v12 }
 0x212   :  { %414 = vpow2.f32 %v328_v40 }
 0x21c   :  { %v415_v41 = vpop.eup %414 }
 0x21d   :  { %v330_v42 = vadd.f32 1e-05, %v415_v41 }
 0x21f   :  { %v331_v43 = vsel %vm151_vm2, %v330_v42, 0.0 }
 0x220   :  { %v332_v44 = vrot.slane %v331_v43, 4 }
 0x222   :  { %v333_v45 = vadd.f32 %v332_v44, %v331_v43 }
 0x224   :  { %v334_v46 = vrot.slane %v333_v45, 2 }
 0x226   :  { %v335_v47 = vadd.f32 %v334_v46, %v333_v45 }
 0x228   :  { %v336_v48 = vrot.slane %v335_v47, 1 }
 0x22a   :  { %v337_v49 = vadd.f32 %v336_v48, %v335_v47 }
 0x22c   :  { %416 = vrcp.f32 %v337_v49 }
 0x236   :  { %v417_v50 = vpop.eup %416 }
 0x237   :  { %v339_v51 = vmul.f32 %v417_v50, %v330_v42 }
 0x239   :  { %340 = vst.msk [vmem:[#allocation2] sm:$0xff] %vm151_vm2, %v339_v51 }
 0x23a   :  { %429 = shalt.err (!%p426_p4)
}
 0x23b   :  { %s430_s15 = scalar_lea.hbm %s548_s5, 128 }
 0x23c   :  { %p431_p5 = scmp.ne.s32.totalorder %s548_s5, %s430_s15  ;;  %p434_p6 = scmp.lt.u32.totalorder %s430_s15, %s548_s5 }
 0x23e   :  { %p436_p7 = pnand %p434_p6, %p431_p5 }
 0x240   :  { %439 = shalt.err (!%p436_p7)
}
 0x241   :  { %350 = dma.vmem_to_hbm [thread:$0]  %s348_s11, 128, %s548_s5, [#allocation3]  }
 0x242   :  { %440 = dma.done.wait [#allocation3], 128  }
 0x243   :  { %441 = vsyncadd [#allocation3], 4294967168 }
 0x244   :  { %354 = vsyncpa [#allocation3], 1 }

</bundles_post_ra>
